<compile_context>
chip_gen: v6e
topology: v6e:2x2x1
jax: 0.10.0
libtpu: 0.0.40
codegen_flags: <defaults>
</compile_context>

<pallas_src>
import functools

import jax
import jax.numpy as jnp
from jax import lax
from jax.experimental import pallas as pl
from jax.experimental.pallas import tpu as pltpu


def _round_up(x, m):
    return (x + m - 1) // m * m


def _vq_kernel(z_ref, e_ref, e2_ref, zq_ref, idx_ref, counts_ref, sse_ref, *,
               n_rows):
    block_n = z_ref.shape[0]
    z = z_ref[...]                      # (block_n, D_pad) f32
    e = e_ref[...]                      # (n_e_pad, D_pad) f32 (resident)
    e2 = e2_ref[...]                    # (1, n_e_pad) f32, sentinel on pads
    n_e_pad = e.shape[0]

    # Distance up to a per-row constant (||z||^2 dropped: argmin-invariant).
    # bf16 operands -> native-rate MXU, f32 accumulation.
    ze = lax.dot_general(
        z.astype(jnp.bfloat16), e.astype(jnp.bfloat16),
        dimension_numbers=(((1,), (1,)), ((), ())),
        preferred_element_type=jnp.float32)          # (block_n, n_e_pad)
    dist = e2 - 2.0 * ze                             # padded cols ~ +1e30

    # First minimal index along the codebook axis (matches torch.argmin).
    dmin = jnp.min(dist, axis=1, keepdims=True)      # (block_n, 1)
    col = lax.broadcasted_iota(jnp.int32, dist.shape, 1)
    idx = jnp.min(jnp.where(dist <= dmin, col, n_e_pad),
                  axis=1, keepdims=True)             # (block_n, 1) int32

    # Rows beyond the real N (padding) are excluded from counts / SSE.
    row = (pl.program_id(0) * block_n
           + lax.broadcasted_iota(jnp.int32, (block_n, 1), 0))
    row_valid = row < n_rows                         # (block_n, 1) bool

    onehot = jnp.where((col == idx) & row_valid, 1.0, 0.0).astype(jnp.float32)

    # Codebook gather as an f32 MXU matmul (exact: one nonzero per row).
    zq = jnp.dot(onehot, e, preferred_element_type=jnp.float32)

    zq_ref[...] = zq
    idx_ref[...] = idx
    counts_ref[...] = jnp.sum(onehot, axis=0, keepdims=True)     # (1, n_e_pad)
    diff = z - zq                                    # padded rows/cols are 0
    sse_ref[...] = jnp.sum(diff * diff, axis=0, keepdims=True)   # (1, D_pad)


def multi_codebook_vq(z, embedding, beta, *, block_n=1024):
    """Forward pass equivalent to MultiCodebookVectorQuantizer.forward."""
    B, k, D = z.shape
    N = B * k
    n_e = embedding.shape[0]

    D_pad = _round_up(D, 128)
    n_e_pad = _round_up(n_e, 128)
    bn = min(block_n, _round_up(N, 8))
    N_pad = _round_up(N, bn)
    grid = N_pad // bn

    z_flat = z.reshape(N, D).astype(jnp.float32)
    z_p = jnp.pad(z_flat, ((0, N_pad - N), (0, D_pad - D)))
    e_p = jnp.pad(embedding.astype(jnp.float32),
                  ((0, n_e_pad - n_e), (0, D_pad - D)))

    # ||e||^2 with a huge sentinel on padded codebook rows so argmin skips them.
    e2 = jnp.sum(e_p * e_p, axis=1)
    e2 = jnp.where(jnp.arange(n_e_pad) < n_e, e2, jnp.float32(1e30))
    e2_p = e2.reshape(1, n_e_pad)

    kernel = functools.partial(_vq_kernel, n_rows=N)

    zq_p, idx_p, counts_p, sse_p = pl.pallas_call(
        kernel,
        out_shape=(
            jax.ShapeDtypeStruct((N_pad, D_pad), jnp.float32),
            jax.ShapeDtypeStruct((N_pad, 1), jnp.int32),
            jax.ShapeDtypeStruct((grid, n_e_pad), jnp.float32),
            jax.ShapeDtypeStruct((grid, D_pad), jnp.float32),
        ),
        grid=(grid,),
        in_specs=[
            pl.BlockSpec((bn, D_pad), lambda i: (i, 0)),
            pl.BlockSpec((n_e_pad, D_pad), lambda i: (0, 0)),   # codebook resident
            pl.BlockSpec((1, n_e_pad), lambda i: (0, 0)),       # e2 resident
        ],
        out_specs=(
            pl.BlockSpec((bn, D_pad), lambda i: (i, 0)),
            pl.BlockSpec((bn, 1), lambda i: (i, 0)),
            pl.BlockSpec((1, n_e_pad), lambda i: (i, 0)),       # per-block counts
            pl.BlockSpec((1, D_pad), lambda i: (i, 0)),         # per-block SSE (per lane)
        ),
        compiler_params=pltpu.CompilerParams(
            dimension_semantics=("parallel",),
            vmem_limit_bytes=48 * 1024 * 1024),                 # v7x-safe (64 MiB/TC)
    )(z_p, e_p, e2_p)

    zq_flat = zq_p[:N, :D]
    indices = idx_p[:N, 0].reshape(B, k)
    counts = jnp.sum(counts_p, axis=0)[:n_e]
    sse = jnp.sum(sse_p)

    # loss = beta * MSE(z, sg(z_q)) + MSE(sg(z), z_q)  (same forward value)
    mse = sse / (N * D)
    loss = beta * mse + mse

    z_q = zq_flat.reshape(B, k, D)
    # straight-through estimator: forward value == z_q, gradient flows to z
    z_q = z + lax.stop_gradient(z_q - z)

    avg_probs = counts / N
    perplexity = jnp.exp(-jnp.sum(avg_probs * jnp.log(avg_probs + 1e-10)))
    return loss, z_q, perplexity, indices


if __name__ == "__main__":
    # module hyper-params
    n_e, e_dim, beta = 64, 32, 0.25
    # input shape (B, k, D)
    B, k = 2, 8

    key = jax.random.PRNGKey(0)
    k_emb, k_z = jax.random.split(key)

    # nn.Embedding(n_e, e_dim).weight.data.uniform_(-1/n_e, 1/n_e)
    embedding = jax.random.uniform(
        k_emb, (n_e, e_dim), dtype=jnp.float32,
        minval=-1.0 / n_e, maxval=1.0 / n_e)
    z = jax.random.normal(k_z, (B, k, e_dim), dtype=jnp.float32)

    loss, z_q, perplexity, indices = multi_codebook_vq(z, embedding, beta)
    jax.block_until_ready((loss, z_q, perplexity, indices))

    # sanity checks against a pure-JAX reference (tolerance-aware: the bf16
    # distance matmul may legitimately flip argmin on near-exact ties)
    zf = z.reshape(-1, e_dim)
    d = (jnp.sum(zf ** 2, 1, keepdims=True) + jnp.sum(embedding ** 2, 1)
         - 2.0 * zf @ embedding.T)
    ref_idx = jnp.argmin(d, axis=1)
    idx_k = indices.reshape(-1)
    rows = jnp.arange(zf.shape[0])
    # chosen codes must be (near-)optimal
    assert bool(jnp.all(d[rows, idx_k] <= d[rows, ref_idx] + 1e-4))
    # the rest of the pipeline must be exact given the chosen indices
    zq_ref = embedding[idx_k].reshape(B, k, e_dim)
    assert jnp.allclose(z_q, zq_ref, atol=1e-5)
    mse_ref = jnp.mean((zf - embedding[idx_k]) ** 2)
    assert jnp.allclose(loss, (1.0 + beta) * mse_ref, atol=1e-5, rtol=1e-5)
    onehot_ref = jax.nn.one_hot(idx_k, n_e, dtype=jnp.float32)
    avg_ref = onehot_ref.mean(axis=0)
    perp_ref = jnp.exp(-jnp.sum(avg_ref * jnp.log(avg_ref + 1e-10)))
    assert jnp.allclose(perplexity, perp_ref, atol=1e-4)

    print("KERNEL_OK")
</pallas_src>

<mosaic_0001>
module attributes {stable_mosaic.version = 11 : i64} {
  func.func @_vq_kernel(%arg0: i32, %arg1: memref<16x128xf32, #tpu.memory_space<vmem>>, %arg2: memref<128x128xf32, #tpu.memory_space<vmem>>, %arg3: memref<1x128xf32, #tpu.memory_space<vmem>>, %arg4: memref<16x128xf32, #tpu.memory_space<vmem>>, %arg5: memref<16x1xi32, #tpu.memory_space<vmem>>, %arg6: memref<1x128xf32, #tpu.memory_space<vmem>>, %arg7: memref<1x128xf32, #tpu.memory_space<vmem>>) attributes {dimension_semantics = [#tpu.dimension_semantics<parallel>], iteration_bounds = array<i64: 1>, scalar_prefetch = 0 : i64, scratch_operands = 0 : i64, tpu.core_type = #tpu.core_type<tc>, window_params = [{transform_indices = @transform_0, window_bounds = array<i64: 16, 128>}, {pipeline_mode = #tpu.pipeline_mode<synchronous>, transform_indices = @transform_1, window_bounds = array<i64: 128, 128>}, {pipeline_mode = #tpu.pipeline_mode<synchronous>, transform_indices = @transform_2, window_bounds = array<i64: 1, 128>}, {transform_indices = @transform_3, window_bounds = array<i64: 16, 128>}, {transform_indices = @transform_4, window_bounds = array<i64: 16, 1>}, {transform_indices = @transform_5, window_bounds = array<i64: 1, 128>}, {transform_indices = @transform_6, window_bounds = array<i64: 1, 128>}]} {
    %c0 = arith.constant 0 : index
    %c0_0 = arith.constant 0 : index
    %0 = vector.load %arg1[%c0, %c0_0] : memref<16x128xf32, #tpu.memory_space<vmem>>, vector<16x128xf32>
    %c0_1 = arith.constant 0 : index
    %c0_2 = arith.constant 0 : index
    %1 = vector.load %arg2[%c0_1, %c0_2] : memref<128x128xf32, #tpu.memory_space<vmem>>, vector<128x128xf32>
    %c0_3 = arith.constant 0 : index
    %c0_4 = arith.constant 0 : index
    %2 = vector.load %arg3[%c0_3, %c0_4] : memref<1x128xf32, #tpu.memory_space<vmem>>, vector<1x128xf32>
    %3 = arith.truncf %0 : vector<16x128xf32> to vector<16x128xbf16>
    %4 = arith.truncf %1 : vector<128x128xf32> to vector<128x128xbf16>
    %cst = arith.constant dense<0.000000e+00> : vector<16x128xf32>
    %5 = tpu.matmul %3, %4, %cst {dimension_numbers = #tpu.dot_dimension_numbers<[1], [1], [0], [0], [0, 0, 1, 0], [], []>} : vector<16x128xbf16>, vector<128x128xbf16>, vector<16x128xf32> -> vector<16x128xf32>
    %cst_5 = arith.constant 2.000000e+00 : f32
    %6 = vector.broadcast %cst_5 : f32 to vector<16x128xf32>
    %7 = arith.mulf %6, %5 : vector<16x128xf32>
    %8 = vector.broadcast %2 : vector<1x128xf32> to vector<16x128xf32>
    %9 = arith.subf %8, %7 : vector<16x128xf32>
    %cst_6 = arith.constant dense<0x7F800000> : vector<16xf32>
    %10 = vector.multi_reduction <minimumf>, %9, %cst_6 [1] : vector<16x128xf32> to vector<16xf32>
    %11 = vector.shape_cast %10 : vector<16xf32> to vector<16x1xf32>
    %12 = tpu.iota {dimensions = array<i32: 1>} : vector<16x128xi32>
    %13 = vector.broadcast %11 : vector<16x1xf32> to vector<16x128xf32>
    %14 = arith.cmpf ole, %9, %13 : vector<16x128xf32>
    %c128_i32 = arith.constant 128 : i32
    %15 = vector.broadcast %c128_i32 : i32 to vector<16x128xi32>
    %16 = arith.select %14, %12, %15 : vector<16x128xi1>, vector<16x128xi32>
    %cst_7 = arith.constant dense<2147483647> : vector<16xi32>
    %17 = vector.multi_reduction <minsi>, %16, %cst_7 [1] : vector<16x128xi32> to vector<16xi32>
    %18 = vector.shape_cast %17 : vector<16xi32> to vector<16x1xi32>
    %c16_i32 = arith.constant 16 : i32
    %19 = arith.muli %arg0, %c16_i32 : i32
    %20 = tpu.iota {dimensions = array<i32: 0>} : vector<16x1xi32>
    %21 = vector.broadcast %19 : i32 to vector<16x1xi32>
    %22 = arith.addi %21, %20 : vector<16x1xi32>
    %c16_i32_8 = arith.constant 16 : i32
    %23 = vector.broadcast %c16_i32_8 : i32 to vector<16x1xi32>
    %24 = arith.cmpi slt, %22, %23 : vector<16x1xi32>
    %25 = vector.broadcast %18 : vector<16x1xi32> to vector<16x128xi32>
    %26 = arith.cmpi eq, %12, %25 : vector<16x128xi32>
    %27 = vector.broadcast %24 : vector<16x1xi1> to vector<16x128xi1>
    %28 = arith.andi %26, %27 : vector<16x128xi1>
    %cst_9 = arith.constant 1.000000e+00 : f32
    %cst_10 = arith.constant 0.000000e+00 : f32
    %29 = vector.broadcast %cst_9 : f32 to vector<16x128xf32>
    %30 = vector.broadcast %cst_10 : f32 to vector<16x128xf32>
    %31 = arith.select %28, %29, %30 : vector<16x128xi1>, vector<16x128xf32>
    %cst_11 = arith.constant dense<0.000000e+00> : vector<16x128xf32>
    %32 = tpu.matmul %31, %1, %cst_11 {dimension_numbers = #tpu.dot_dimension_numbers<[1], [0], [0], [1], [0, 0, 1, 1], [], []>} : vector<16x128xf32>, vector<128x128xf32>, vector<16x128xf32> -> vector<16x128xf32>
    %c0_12 = arith.constant 0 : index
    %c0_13 = arith.constant 0 : index
    %33 = vector.load %arg4[%c0_12, %c0_13] : memref<16x128xf32, #tpu.memory_space<vmem>>, vector<16x128xf32>
    tpu.vector_store %arg4[%c0_12, %c0_13], %32 {strides = array<i32>} : memref<16x128xf32, #tpu.memory_space<vmem>>, vector<16x128xf32>,
    %c0_14 = arith.constant 0 : index
    %c0_15 = arith.constant 0 : index
    %34 = vector.load %arg5[%c0_14, %c0_15] : memref<16x1xi32, #tpu.memory_space<vmem>>, vector<16x1xi32>
    tpu.vector_store %arg5[%c0_14, %c0_15], %18 {strides = array<i32>} : memref<16x1xi32, #tpu.memory_space<vmem>>, vector<16x1xi32>,
    %cst_16 = arith.constant dense<0.000000e+00> : vector<128xf32>
    %35 = vector.multi_reduction <add>, %31, %cst_16 [0] : vector<16x128xf32> to vector<128xf32>
    %36 = vector.shape_cast %35 : vector<128xf32> to vector<1x128xf32>
    %c0_17 = arith.constant 0 : index
    %c0_18 = arith.constant 0 : index
    %37 = vector.load %arg6[%c0_17, %c0_18] : memref<1x128xf32, #tpu.memory_space<vmem>>, vector<1x128xf32>
    tpu.vector_store %arg6[%c0_17, %c0_18], %36 {strides = array<i32>} : memref<1x128xf32, #tpu.memory_space<vmem>>, vector<1x128xf32>,
    %38 = arith.subf %0, %32 : vector<16x128xf32>
    %39 = arith.mulf %38, %38 : vector<16x128xf32>
    %cst_19 = arith.constant dense<0.000000e+00> : vector<128xf32>
    %40 = vector.multi_reduction <add>, %39, %cst_19 [0] : vector<16x128xf32> to vector<128xf32>
    %41 = vector.shape_cast %40 : vector<128xf32> to vector<1x128xf32>
    %c0_20 = arith.constant 0 : index
    %c0_21 = arith.constant 0 : index
    %42 = vector.load %arg7[%c0_20, %c0_21] : memref<1x128xf32, #tpu.memory_space<vmem>>, vector<1x128xf32>
    tpu.vector_store %arg7[%c0_20, %c0_21], %41 {strides = array<i32>} : memref<1x128xf32, #tpu.memory_space<vmem>>, vector<1x128xf32>,
    return
  }
  func.func @transform_0(%arg0: i32) -> (i32, i32) {
    %c0_i32 = arith.constant 0 : i32
    %c0_i32_0 = arith.constant 0 : i32
    return %arg0, %c0_i32 : i32, i32
  }
  func.func @transform_1(%arg0: i32) -> (i32, i32) {
    %c0_i32 = arith.constant 0 : i32
    %c0_i32_0 = arith.constant 0 : i32
    %c0_i32_1 = arith.constant 0 : i32
    return %c0_i32, %c0_i32_0 : i32, i32
  }
  func.func @transform_2(%arg0: i32) -> (i32, i32) {
    %c0_i32 = arith.constant 0 : i32
    %c0_i32_0 = arith.constant 0 : i32
    %c0_i32_1 = arith.constant 0 : i32
    return %c0_i32, %c0_i32_0 : i32, i32
  }
  func.func @transform_3(%arg0: i32) -> (i32, i32) {
    %c0_i32 = arith.constant 0 : i32
    %c0_i32_0 = arith.constant 0 : i32
    return %arg0, %c0_i32 : i32, i32
  }
  func.func @transform_4(%arg0: i32) -> (i32, i32) {
    %c0_i32 = arith.constant 0 : i32
    %c0_i32_0 = arith.constant 0 : i32
    return %arg0, %c0_i32 : i32, i32
  }
  func.func @transform_5(%arg0: i32) -> (i32, i32) {
    %c0_i32 = arith.constant 0 : i32
    %c0_i32_0 = arith.constant 0 : i32
    return %arg0, %c0_i32 : i32, i32
  }
  func.func @transform_6(%arg0: i32) -> (i32, i32) {
    %c0_i32 = arith.constant 0 : i32
    %c0_i32_0 = arith.constant 0 : i32
    return %arg0, %c0_i32 : i32, i32
  }
}

</mosaic_0001>

<bundles_post_ra>
// kernel: tpu_custom_call.1
= control target key start
LH: loop header
LB: loop body
LE: loop exit
PB: predicated region body
PF: predicated region fallthrough
CT: control target
= control target key end

     0   :  { %12 = vsyncpa [#allocation3], 0  ;;  %s634_s0 = inlined_call_operand.hbm [shape: f32[16,128], index: 0, kind: input, shape index: {}]   ;;  %s635_s1 = inlined_call_operand.hbm [shape: f32[128,128], index: 1, kind: input, shape index: {}]   ;;  %s636_s2 = inlined_call_operand.vmem [shape: f32[1,128], index: 2, kind: input, shape index: {}]   ;;  %s637_s3 = inlined_call_operand.hbm [shape: f32[16,128], index: 3, kind: output, shape index: {0}]   ;;  %s638_s4 = inlined_call_operand.vmem [shape: s32[16,1], index: 4, kind: output, shape index: {1}]   ;;  %s639_s5 = inlined_call_operand.hbm [shape: f32[1,128], index: 5, kind: output, shape index: {2}]   ;;  %s640_s6 = inlined_call_operand.hbm [shape: f32[1,128], index: 6, kind: output, shape index: {3}]  }
   0x1   :  { %13 = vsyncpa [#allocation6], 0 }
   0x2   :  { %14 = vsyncpa [#allocation4], 0 }
   0x3   :  { %15 = vsyncpa [#allocation9], 0  ;;  %s537_s21 = smov [#allocation2]  }
   0x4   :  { %s21_s22 = sshll.u32 %s537_s21, 4  ;;  %s22_s22 = int_to_ptr.vmem [resolvable:$true] %s21_s22 }
   0x5   :  { %s437_s23 = scalar_lea.vmem %s22_s22, 256  ;;  %p442_p1 = scmp.lt.s32.totalorder %s22_s22, %s22_s22 }
   0x6   :  { %p438_p0 = scmp.ne.s32.totalorder %s22_s22, %s437_s23  ;;  %p443_p2 = scmp.lt.s32.totalorder %s437_s23, %s437_s23 }
   0x8   :  { %p444_p3 = por %p443_p2, %p442_p1 }
   0xa   :  { %p445_p4 = pnand %p444_p3, %p438_p0 }
   0xc   :  { %448 = shalt.err (!%p445_p4)
}
   0xd   :  { %s538_s24 = smov 128   ;;  %s539_s25 = smov 8  }
   0xe   :  { %27 = dma.hbm_to_vmem [thread:$0]  %s634_s0, 256, %s22_s22, [#allocation3], %s538_s24, %s538_s24, %s539_s25  }
   0xf   :  { %s540_s28 = smov [#allocation5]  }
  0x10   :  { %s33_s29 = sshll.u32 %s540_s28, 4  ;;  %s34_s29 = int_to_ptr.vmem [resolvable:$true] %s33_s29 }
  0x11   :  { %s457_s30 = scalar_lea.vmem %s34_s29, 2048  ;;  %p462_p6 = scmp.lt.s32.totalorder %s34_s29, %s34_s29 }
  0x12   :  { %p458_p5 = scmp.ne.s32.totalorder %s34_s29, %s457_s30  ;;  %p463_p7 = scmp.lt.s32.totalorder %s457_s30, %s457_s30 }
  0x14   :  { %p464_p8 = por %p463_p7, %p462_p6 }
  0x16   :  { %p465_p9 = pnand %p464_p8, %p458_p5 }
  0x18   :  { %468 = shalt.err (!%p465_p9)
}
  0x19   :  { %39 = dma.hbm_to_vmem [thread:$0]  %s635_s1, 2048, %s34_s29, [#allocation6], %s538_s24, %s538_s24, %s539_s25  }
  0x1a   :  { %529 = dma.done.wait [#allocation3], 256  }
  0x1b   :  { %530 = vsyncadd [#allocation3], 4294967040 }
  0x1c   :  { %531 = dma.done.wait [#allocation6], 2048  }
  0x1d   :  { %532 = vsyncadd [#allocation6], 4294965248  ;;  %v541_v0 = vmov 0.0   ;;  %vm542_vm0 = vmmov 0   ;;  %v65_v1 = vld [vmem:[#allocation5 + $0x70] sm:$0xff]  ;;  %v66_v2 = vld [vmem:[#allocation5 + $0x78] sm:$0xff]  ;;  %v132_v37 = vlaneseq }
  0x1e   :  { %364 = vmatprep.subr.bf16.mxu0 %v541_v0  ;;  %380 = vmatprep.mubr.msk.bf16.mxu0 %vm542_vm0, %v541_v0  ;;  %v76_v3 = vpack.c.bf16 %v66_v2, %v65_v1  ;;  %v63_v4 = vld [vmem:[#allocation5 + $0x60] sm:$0xff]  ;;  %v64_v5 = vld [vmem:[#allocation5 + $0x68] sm:$0xff]  ;;  %v62_v7 = vld [vmem:[#allocation5 + $0x58] sm:$0xff]  ;;  %vm262_vm5 = vcmask 7168   ;;  %s544_s12 = smov [#allocation8]  }
  0x1f   :  { %384 = vmatprep.subr.mxu1 %v66_v2  ;;  %v75_v6 = vpack.c.bf16 %v64_v5, %v63_v4  ;;  %v61_v8 = vld [vmem:[#allocation5 + $0x50] sm:$0xff]  ;;  %v60_v9 = vld [vmem:[#allocation5 + $0x48] sm:$0xff]  ;;  %v59_v10 = vld [vmem:[#allocation5 + $0x40] sm:$0xff]  ;;  %v133_v38 = vand.u32 127, %v132_v37  ;;  %s305_s13 = sshll.u32 %s544_s12, 4  ;;  %s306_s13 = int_to_ptr.vmem [resolvable:$true] %s305_s13 }
  0x20   :  { %385 = vmatpush3.msra.mxu1 %v66_v2  ;;  %365 = vmatpush3.bf16.xpose.msra.mxu0 %v76_v3  ;;  %v74_v11 = vpack.c.bf16 %v62_v7, %v61_v8  ;;  %v58_v12 = vld [vmem:[#allocation5 + $0x38] sm:$0xff]  ;;  %v57_v13 = vld [vmem:[#allocation5 + $0x30] sm:$0xff]  ;;  %v56_v14 = vld [vmem:[#allocation5 + $0x28] sm:$0xff]  ;;  %v73_v16 = vpack.c.bf16 %v60_v9, %v59_v10  ;;  %s469_s14 = scalar_lea.vmem %s306_s13, 16  ;;  %s473_s15 = scalar_lea.vmem %s306_s13, 32 }
  0x21   :  { %386 = vmatprep.subr.mxu1 %v65_v1  ;;  %366 = vmatprep.subr.bf16.mxu0 %v541_v0  ;;  %v55_v15 = vld [vmem:[#allocation5 + $0x20] sm:$0xff]  ;;  %v54_v17 = vld [vmem:[#allocation5 + $0x18] sm:$0xff]  ;;  %v53_v18 = vld [vmem:[#allocation5 + $0x10] sm:$0xff]  ;;  %v72_v21 = vpack.c.bf16 %v58_v12, %v57_v13  ;;  %p470_p10 = scmp.ne.s32.totalorder %s306_s13, %s469_s14  ;;  %p474_p11 = scmp.lt.s32.totalorder %s306_s13, %s306_s13 }
  0x22   :  { %387 = vmatpush3.msra.mxu1 %v65_v1  ;;  %v52_v19 = vld [vmem:[#allocation5 + $0x8] sm:$0xff]  ;;  %v51_v20 = vld [vmem:[#allocation5] sm:$0xff]  ;;  %v71_v22 = vpack.c.bf16 %v56_v14, %v55_v15  ;;  %v70_v23 = vpack.c.bf16 %v54_v17, %v53_v18  ;;  %v603_v25 = vld [vmem:[#allocation2] sm:$0xff]  ;;  %v543_v1 = vmov 1.0   ;;  %p475_p12 = scmp.lt.s32.totalorder %s473_s15, %s469_s14 }
  0x23   :  { %388 = vmatprep.subr.mxu1 %v64_v5  ;;  %v69_v24 = vpack.c.bf16 %v52_v19, %v51_v20  ;;  %v605_v26 = vld [vmem:[#allocation2 + $0x8] sm:$0xff]  ;;  %v334_v29 = vld [vmem:[%s636_s2] ss:$0 sm:$0xff] }
  0x24   :  { %389 = vmatpush3.msra.mxu1 %v64_v5  ;;  %v68_v27 = vpack.c.bf16 %v605_v26, %v603_v25  ;;  %p476_p13 = por %p475_p12, %p474_p11 }
  0x25   :  { %390 = vmatprep.subr.mxu1 %v63_v4 }
  0x26   :  { %391 = vmatpush3.msra.mxu1 %v63_v4  ;;  %p477_p0 = pnand %p476_p13, %p470_p10 }
  0x27   :  { %392 = vmatprep.subr.mxu1 %v62_v7 }
  0x28   :  { %393 = vmatpush3.msra.mxu1 %v62_v7  ;;  %367 = vmatpush3.bf16.xpose.msra.mxu0 %v75_v6 }
  0x29   :  { %394 = vmatprep.subr.mxu1 %v61_v8  ;;  %368 = vmatprep.subr.bf16.mxu0 %v541_v0 }
  0x2a   :  { %395 = vmatpush3.msra.mxu1 %v61_v8 }
  0x2b   :  { %396 = vmatprep.subr.mxu1 %v60_v9 }
  0x2c   :  { %397 = vmatpush3.msra.mxu1 %v60_v9 }
  0x2d   :  { %398 = vmatprep.subr.mxu1 %v59_v10 }
  0x2e   :  { %399 = vmatpush3.msra.mxu1 %v59_v10 }
  0x2f   :  { %400 = vmatprep.subr.mxu1 %v58_v12 }
  0x30   :  { %401 = vmatpush3.msra.mxu1 %v58_v12  ;;  %369 = vmatpush3.bf16.xpose.msra.mxu0 %v74_v11 }
  0x31   :  { %402 = vmatprep.subr.mxu1 %v57_v13  ;;  %370 = vmatprep.subr.bf16.mxu0 %v541_v0 }
  0x32   :  { %403 = vmatpush3.msra.mxu1 %v57_v13 }
  0x33   :  { %404 = vmatprep.subr.mxu1 %v56_v14 }
  0x34   :  { %405 = vmatpush3.msra.mxu1 %v56_v14 }
  0x35   :  { %406 = vmatprep.subr.mxu1 %v55_v15 }
  0x36   :  { %407 = vmatpush3.msra.mxu1 %v55_v15 }
  0x37   :  { %408 = vmatprep.subr.mxu1 %v54_v17 }
  0x38   :  { %409 = vmatpush3.msra.mxu1 %v54_v17  ;;  %371 = vmatpush3.bf16.xpose.msra.mxu0 %v73_v16 }
  0x39   :  { %410 = vmatprep.subr.mxu1 %v53_v18  ;;  %372 = vmatprep.subr.bf16.mxu0 %v541_v0 }
  0x3a   :  { %411 = vmatpush3.msra.mxu1 %v53_v18 }
  0x3b   :  { %412 = vmatprep.subr.mxu1 %v52_v19 }
  0x3c   :  { %413 = vmatpush3.msra.mxu1 %v52_v19 }
  0x3d   :  { %414 = vmatprep.subr.mxu1 %v51_v20 }
  0x3e   :  { %415 = vmatpush3.msra.mxu1 %v51_v20 }
  0x40   :  { %373 = vmatpush3.bf16.xpose.msra.mxu0 %v72_v21 }
  0x41   :  { %374 = vmatprep.subr.bf16.mxu0 %v541_v0 }
  0x48   :  { %375 = vmatpush3.bf16.xpose.msra.mxu0 %v71_v22 }
  0x49   :  { %376 = vmatprep.subr.bf16.mxu0 %v541_v0 }
  0x50   :  { %377 = vmatpush3.bf16.xpose.msra.mxu0 %v70_v23 }
  0x51   :  { %378 = vmatprep.subr.bf16.mxu0 %v541_v0 }
  0x58   :  { %379 = vmatpush3.bf16.xpose.msra.mxu0 %v69_v24 }
  0x5f   :  { %381 = vmatmul.mubr.bf16.vlgmr.msra.gmra.mxu0 %v68_v27 }
 0x11f   :  { %v111_v28 = vpop.f32.mrf.mxu0 }
 0x120   :  { %v118_v30 = vmul.f32 2.0, %v111_v28 }
 0x121   :  { %v382_v31 = vpop.f32.mrf.mxu0 }
 0x122   :  { %v126_v32 = vsub.f32 %v334_v29, %v118_v30 }
 0x123   :  { %v114_v33 = vpop.f32.mrf.mxu0 }
 0x124   :  { %v119_v34 = vmul.f32 2.0, %v114_v33  ;;  %128 = vmin.xlane.f32.xlu0 %v126_v32 }
 0x125   :  { %v383_v35 = vpop.f32.mrf.mxu0 }
 0x126   :  { %v127_v36 = vsub.f32 %v334_v29, %v119_v34 }
 0x128   :  { %130 = vmin.xlane.f32.xlu0 %v127_v36 }
 0x1ad   :  { %v129_v39 = vpop.xlane.xlu0 %128 }
 0x1ae   :  { %vm134_vm1 = vcmp.le.f32.partialorder %v126_v32, %v129_v39 }
 0x1af   :  { %v136_v40 = vsel %vm134_vm1, %v133_v38, 128 }
 0x1b0   :  { %v139_v41 = vshra.s32 %v136_v40, 16  ;;  %v138_v47 = vand.u32 65535, %v136_v40 }
 0x1b1   :  { %v131_v42 = vpop.xlane.xlu0 %130 }
 0x1b2   :  { %vm135_vm2 = vcmp.le.f32.partialorder %v127_v36, %v131_v42  ;;  %v141_v43 = vcvt.s32.f32 %v139_v41  ;;  %v140_v50 = vcvt.s32.f32 %v138_v47 }
 0x1b3   :  { %v137_v44 = vsel %vm135_vm2, %v133_v38, 128 }
 0x1b4   :  { %142 = vmin.xlane.f32.xlu1 %v141_v43  ;;  %v153_v45 = vshra.s32 %v137_v44, 16  ;;  %v152_v48 = vand.u32 65535, %v137_v44 }
 0x1b6   :  { %v155_v46 = vcvt.s32.f32 %v153_v45  ;;  %v154_v53 = vcvt.s32.f32 %v152_v48 }
 0x1b8   :  { %156 = vmin.xlane.f32.xlu1 %v155_v46 }
 0x23d   :  { %v143_v49 = vpop.xlane.xlu1 %142 }
 0x23e   :  { %vm144_vm3 = vcmp.eq.f32.partialorder %v141_v43, %v143_v49  ;;  %v149_v55 = vcvt.f32.s32 %v143_v49 }
 0x23f   :  { %v145_v51 = vsel %vm144_vm3, %v140_v50, inf }
 0x240   :  { %146 = vmin.xlane.f32.xlu0 %v145_v51  ;;  %v150_v57 = vshll.u32 %v149_v55, 16 }
 0x241   :  { %v157_v52 = vpop.xlane.xlu1 %156 }
 0x242   :  { %vm158_vm4 = vcmp.eq.f32.partialorder %v155_v46, %v157_v52  ;;  %v163_v58 = vcvt.f32.s32 %v157_v52 }
 0x243   :  { %v159_v54 = vsel %vm158_vm4, %v154_v53, inf }
 0x244   :  { %160 = vmin.xlane.f32.xlu1 %v159_v54  ;;  %v164_v62 = vshll.u32 %v163_v58, 16 }
 0x2c9   :  { %v147_v56 = vpop.xlane.xlu0 %146 }
 0x2ca   :  { %v148_v59 = vcvt.f32.s32 %v147_v56 }
 0x2cc   :  { %v151_v60 = vadd.s32 %v150_v57, %v148_v59 }
 0x2cd   :  { %v161_v61 = vpop.xlane.xlu1 %160 }
 0x2ce   :  { %263 = vst.msk [vmem:[%s638_s4] sm:$0xff] %vm262_vm5, %v151_v60  ;;  %v162_v63 = vcvt.f32.s32 %v161_v61  ;;  %vm175_vm6 = vcmp.eq.s32.totalorder %v133_v38, %v151_v60 }
 0x2cf   :  { %416 = vmatprep.mubr.msk.f32.mxu1 %vm175_vm6, %v543_v1  ;;  %v183_v3 = vsel %vm175_vm6, 1.0, %v541_v0 }
 0x2d0   :  { %v165_v2 = vadd.s32 %v164_v62, %v162_v63 }
 0x2d2   :  { %vm176_vm7 = vcmp.eq.s32.totalorder %v133_v38, %v165_v2  ;;  %264 = vst.msk [vmem:[%s638_s4 + $0x8] sm:$0xff] %vm262_vm5, %v165_v2 }
 0x2d3   :  { %v184_v4 = vsel %vm176_vm7, 1.0, %v541_v0  ;;  %417 = vmatmul.mubr.msk.f32.vlgmr.msra.gmra.mxu1 %vm176_vm7, %v543_v1 }
 0x2d4   :  { %v265_v5 = vadd.f32 %v184_v4, %v183_v3 }
 0x2d6   :  { %v266_v6 = vrot.slane %v265_v5, 4 }
 0x2d8   :  { %v267_v7 = vadd.f32 %v266_v6, %v265_v5 }
 0x2da   :  { %v268_v8 = vrot.slane %v267_v7, 2 }
 0x2dc   :  { %v269_v9 = vadd.f32 %v268_v8, %v267_v7 }
 0x2de   :  { %v270_v10 = vrot.slane %v269_v9, 1 }
 0x2e0   :  { %v271_v11 = vadd.f32 %v270_v10, %v269_v9 }
 0x2e2   :  { %272 = vst [vmem:[#allocation8] sm:$0x1] %v271_v11 }
 0x2e3   :  { %480 = shalt.err (!%p477_p0)
}
 0x2e4   :  { %308 = dma.vmem_to_hbm [thread:$0]  %s306_s13, 16, %s639_s5, [#allocation9]  }
 0x2e5   :  { %s545_s17 = smov [#allocation7]  }
 0x2e6   :  { %s290_s18 = sshll.u32 %s545_s17, 4  ;;  %s291_s18 = int_to_ptr.vmem [resolvable:$true] %s290_s18 }
 0x2e7   :  { %s489_s19 = scalar_lea.vmem %s291_s18, 256  ;;  %p494_p2 = scmp.lt.s32.totalorder %s291_s18, %s291_s18 }
 0x2e8   :  { %p490_p1 = scmp.ne.s32.totalorder %s291_s18, %s489_s19  ;;  %p495_p3 = scmp.lt.s32.totalorder %s489_s19, %s489_s19 }
 0x2ea   :  { %p496_p4 = por %p495_p3, %p494_p2 }
 0x2ec   :  { %p497_p5 = pnand %p496_p4, %p490_p1 }
 0x393   :  { %v418_v0 = vpop.f32.mrf.mxu1 }
 0x394   :  { %261 = vst [vmem:[#allocation7 + $0x8] sm:$0xff] %v418_v0  ;;  %v274_v12 = vsub.f32 %v605_v26, %v418_v0 }
 0x395   :  { %v251_v13 = vpop.f32.mrf.mxu1 }
 0x396   :  { %260 = vst [vmem:[#allocation7] sm:$0xff] %v251_v13  ;;  %v273_v14 = vsub.f32 %v603_v25, %v251_v13 }
 0x397   :  { %500 = shalt.err (!%p497_p5)
}
 0x398   :  { %296 = dma.vmem_to_hbm [thread:$0]  %s291_s18, 256, %s637_s3, [#allocation4], %s538_s24, %s538_s24, %s539_s25   ;;  %v276_v15 = vmul.f32 %v274_v12, %v274_v12  ;;  %v275_v16 = vmul.f32 %v273_v14, %v273_v14 }
 0x399   :  { %s546_s21 = smov [#allocation10]  }
 0x39a   :  { %v277_v17 = vadd.f32 %v276_v15, %v275_v16  ;;  %s315_s22 = sshll.u32 %s546_s21, 4  ;;  %s316_s22 = int_to_ptr.vmem [resolvable:$true] %s315_s22 }
 0x39b   :  { %s509_s23 = scalar_lea.vmem %s316_s22, 16  ;;  %s513_s26 = scalar_lea.vmem %s316_s22, 32 }
 0x39c   :  { %v278_v18 = vrot.slane %v277_v17, 4  ;;  %p510_p6 = scmp.ne.s32.totalorder %s316_s22, %s509_s23  ;;  %p514_p7 = scmp.lt.s32.totalorder %s316_s22, %s316_s22 }
 0x39d   :  { %p515_p8 = scmp.lt.s32.totalorder %s513_s26, %s509_s23 }
 0x39e   :  { %v279_v19 = vadd.f32 %v278_v18, %v277_v17 }
 0x39f   :  { %p516_p9 = por %p515_p8, %p514_p7 }
 0x3a0   :  { %v280_v20 = vrot.slane %v279_v19, 2 }
 0x3a1   :  { %p517_p10 = pnand %p516_p9, %p510_p6 }
 0x3a2   :  { %v281_v21 = vadd.f32 %v280_v20, %v279_v19 }
 0x3a4   :  { %v282_v22 = vrot.slane %v281_v21, 1 }
 0x3a6   :  { %v283_v23 = vadd.f32 %v282_v22, %v281_v21 }
 0x3a8   :  { %284 = vst [vmem:[#allocation10] sm:$0x1] %v283_v23 }
 0x3a9   :  { %520 = shalt.err (!%p517_p10)
}
 0x3aa   :  { %318 = dma.vmem_to_hbm [thread:$0]  %s316_s22, 16, %s640_s6, [#allocation9]  }
 0x3ab   :  { %533 = dma.done.wait [#allocation4], 256  }
 0x3ac   :  { %534 = vsyncadd [#allocation4], 4294967040 }
 0x3ad   :  { %535 = dma.done.wait [#allocation9], 32  }
 0x3ae   :  { %536 = vsyncadd [#allocation9], 4294967264 }
 0x3af   :  { %330 = vsyncpa [#allocation3], 1 }
 0x3b0   :  { %331 = vsyncpa [#allocation6], 1 }
 0x3b1   :  { %332 = vsyncpa [#allocation4], 1 }
 0x3b2   :  { %333 = vsyncpa [#allocation9], 1 }

</bundles_post_ra>
